<compile_context>
chip_gen: v7x
topology: tpu7x:2x2x1
jax: 0.10.0
libtpu: 0.0.40
codegen_flags: <defaults>
</compile_context>

<pallas_src>
import math
import functools

import jax
import jax.numpy as jnp
from jax.experimental import pallas as pl
from jax.experimental.pallas import tpu as pltpu


def make_pe_table(max_len: int, d_model: int, dtype=jnp.float32) -> jnp.ndarray:
    """Same math as the PyTorch __init__: (max_len, d_model) sinusoidal table."""
    position = jnp.arange(max_len, dtype=jnp.float32)[:, None]                # (L, 1)
    div_term = jnp.exp(
        jnp.arange(0, d_model, 2, dtype=jnp.float32) * (-math.log(10000.0) / d_model)
    )                                                                          # (ceil(D/2),)
    angles = position * div_term                                               # (L, ceil(D/2))
    pe = jnp.zeros((max_len, d_model), dtype=jnp.float32)
    pe = pe.at[:, 0::2].set(jnp.sin(angles))
    pe = pe.at[:, 1::2].set(jnp.cos(angles)[:, : d_model // 2])                # odd-D guard
    return pe.astype(dtype)


def _choose_seq_tile(S, D, itemsize, mult, stream_row_bytes, resident_bytes):
    """Pick the sequence tile TS.

    stream_row_bytes: double-buffered bytes per sequence row over all (TS, D) streams.
    resident_bytes  : bytes of per-call VMEM-resident buffers (pe table, offsets).
    """
    TILE_BUDGET = 4 << 20      # ~4 MiB per (TS, D) stream tile (review: 4-8 MiB)
    VMEM_CAP = 40 << 20        # total working-set cap; safe on v7x's 64 MiB VMEM
    rows_budget = max(mult, TILE_BUDGET // max(D * itemsize, 1))
    avail = VMEM_CAP - resident_bytes
    rows_vmem = max(mult, avail // max(stream_row_bytes, 1)) if avail > 0 else mult
    ts = min(rows_budget, rows_vmem)
    if ts >= S:
        return S
    return max(mult, (ts // mult) * mult)


def _lsr32(v, k: int):
    """Logical right shift of an int32 array by a static amount k."""
    return jnp.right_shift(v, k) & jnp.int32((1 << (32 - k)) - 1)


def _posenc_kernel(*refs, seq_len, keep_threshold, inv_keep,
                   has_offsets, has_dropout, gather_via_matmul):
    """refs = ([seed], x, pe, [offsets], out).

    x_ref / o_ref : (TS, D) tile of the current (seq_tile, batch) grid point.
    pe_ref        : (TS, D) tile (offsets=None)  or  (max_len, D) resident table.
    off_ref       : (B, S) int32, VMEM-resident (offsets path).
    seed_ref      : (1,) int32 SMEM scalar-prefetch seed (training mode).
    """
    it = iter(refs)
    seed_ref = next(it) if has_dropout else None
    x_ref = next(it)
    pe_ref = next(it)
    off_ref = next(it) if has_offsets else None
    o_ref = next(it)

    s = pl.program_id(0)          # sequence-tile index
    b = pl.program_id(1)          # batch index (innermost grid axis)

    x = x_ref[...]                # (TS, D)
    ts, d = x.shape

    if has_offsets:
        # offsets are fully VMEM-resident (B, S); slice this tile's row window.
        offs = jax.lax.dynamic_slice(off_ref[...], (b, s * ts), (1, ts))[0]    # (TS,)
        if gather_via_matmul:
            # One-hot gather on the otherwise-idle MXU (exact for 16-bit tables).
            L = pe_ref.shape[0]
            col = jax.lax.broadcasted_iota(jnp.int32, (ts, L), 1)
            onehot = (col == offs[:, None]).astype(pe_ref.dtype)               # (TS, L)
            pe_rows = jnp.dot(onehot, pe_ref[...],
                              preferred_element_type=jnp.float32).astype(x.dtype)
        else:
            pe_rows = jnp.take(pe_ref[...], offs, axis=0).astype(x.dtype)      # (TS, D)
    else:
        pe_rows = pe_ref[...]                                                  # (TS, D)

    y = x + pe_rows

    if has_dropout:
        # Inverted dropout with an in-kernel counter-based keep mask: no extra HBM
        # stream; pure VPU integer ops are free in this HBM-bound kernel.
        # TODO(synk): use pltpu.prng_seed/prng_random_bits where the HW PRNG lowers.
        row = jax.lax.broadcasted_iota(jnp.int32, (ts, d), 0) + (b * seq_len + s * ts)
        col = jax.lax.broadcasted_iota(jnp.int32, (ts, d), 1)
        z = seed_ref[0] + row * jnp.int32(d) + col
        z = (z ^ jnp.int32(61)) ^ _lsr32(z, 16)          # Wang integer hash (wraps)
        z = z * jnp.int32(9)
        z = z ^ _lsr32(z, 4)
        z = z * jnp.int32(0x27D4EB2D)
        z = z ^ _lsr32(z, 15)
        u = _lsr32(z, 9) & jnp.int32((1 << 23) - 1)      # 23 uniform bits in [0, 2^23)
        keep = (u < jnp.int32(keep_threshold)).astype(y.dtype)
        y = y * keep * jnp.asarray(inv_keep, dtype=y.dtype)

    o_ref[...] = y.astype(o_ref.dtype)


def positional_encoding(x, pe, *, offsets=None, p=0.1, deterministic=True,
                        rng_key=None):
    """Forward pass of PositionalEncoding.

    x:  (B, S, D) float array
    pe: (max_len, D) sinusoidal table (from make_pe_table)
    offsets: optional (B, S) int row indices into pe (the `offsets` path)
    deterministic: True => dropout is identity (nn.Dropout.eval())
    """
    B, S, D = x.shape
    pe = pe.astype(x.dtype)
    L = pe.shape[0]
    itemsize = jnp.dtype(x.dtype).itemsize

    has_offsets = offsets is not None
    has_dropout = (not deterministic) and (p > 0.0)
    if has_dropout:
        if not (0.0 < p < 1.0):
            raise ValueError(f"dropout p must be in [0, 1), got {p}")
        if rng_key is None:
            raise ValueError("rng_key is required when deterministic=False and p > 0")

    # ---- tile planning (large lane-dense tiles, v7x-safe working set) ----
    mult = max(8, 32 // itemsize)                       # sublane packing: f32 8 / bf16 16 / i8 32
    n_streams = 2 + (0 if has_offsets else 1)           # x, out [, pe tile]
    stream_row_bytes = 2 * n_streams * D * itemsize     # double-buffered bytes per seq row
    resident_bytes = 0
    if has_offsets:
        resident_bytes += 2 * L * D * itemsize          # resident pe table (2 bufs by default)
        resident_bytes += 2 * B * S * 4                 # resident offsets
    TS = _choose_seq_tile(S, D, itemsize, mult, stream_row_bytes, resident_bytes)
    n_s = pl.cdiv(S, TS)
    # v7x: keep >= 2 grid steps so both TensorCores get work.
    if n_s * B < 2 and S >= 2 * mult:
        TS = max(mult, ((S // 2) // mult) * mult)
        n_s = pl.cdiv(S, TS)
    grid = (n_s, B)     # batch innermost: pe/offsets block indices constant across it

    vmem_working = TS * stream_row_bytes + resident_bytes
    vmem_limit = int(min(max(vmem_working + (2 << 20), 16 << 20), 64 << 20))

    # ---- specs (index maps take *_ to absorb the scalar-prefetch ref) ----
    in_specs = [pl.BlockSpec((None, TS, D), lambda s, b, *_: (b, s, 0))]        # x
    args = [x]

    gather_via_matmul = False
    if not has_offsets:
        in_specs.append(pl.BlockSpec((TS, D), lambda s, b, *_: (s, 0)))         # pe tile
        args.append(pe)             # full table passed; only rows < S ever touched
    else:
        # Full pe table resident in VMEM (constant block index -> DMA'd once).
        # TODO(synk): single-buffer the resident table (pl.Buffered(1)) to halve its
        # VMEM footprint for very large max_len on v7x once that path is robust.
        in_specs.append(pl.BlockSpec((L, D), lambda s, b, *_: (0, 0)))
        args.append(pe)
        # Lane-dense (B, S) int32 offsets, VMEM-resident (constant block index).
        in_specs.append(pl.BlockSpec((B, S), lambda s, b, *_: (0, 0)))
        args.append(offsets.astype(jnp.int32))
        # One-hot MXU gather: exact for 16-bit tables, cheap while the one-hot tile
        # stays small; otherwise fall back to jnp.take on the resident table.
        gather_via_matmul = (itemsize <= 2) and (TS * L * itemsize <= (2 << 20))

    scalar_args = []
    if has_dropout:
        seed = jax.random.randint(rng_key, (1,), 0, jnp.iinfo(jnp.int32).max,
                                  dtype=jnp.int32)
        scalar_args = [seed]

    kernel = functools.partial(
        _posenc_kernel,
        seq_len=S,
        keep_threshold=int(round((1.0 - p) * (1 << 23))) if has_dropout else 0,
        inv_keep=(1.0 / (1.0 - p)) if has_dropout else 1.0,
        has_offsets=has_offsets,
        has_dropout=has_dropout,
        gather_via_matmul=gather_via_matmul)

    grid_spec = pltpu.PrefetchScalarGridSpec(
        num_scalar_prefetch=1 if has_dropout else 0,
        grid=grid,
        in_specs=in_specs,
        out_specs=pl.BlockSpec((None, TS, D), lambda s, b, *_: (b, s, 0)))

    return pl.pallas_call(
        kernel,
        out_shape=jax.ShapeDtypeStruct((B, S, D), x.dtype),
        grid_spec=grid_spec,
        compiler_params=pltpu.CompilerParams(
            dimension_semantics=("parallel", "parallel"),
            vmem_limit_bytes=vmem_limit),
    )(*scalar_args, *args)


if __name__ == "__main__":
    # Small shapes consistent with the module: batch=2, seq=8, d_model=32.
    B, S, D = 2, 8, 32
    MAX_LEN = 64

    key = jax.random.PRNGKey(0)
    kx, koff, kd = jax.random.split(key, 3)
    x = jax.random.normal(kx, (B, S, D), dtype=jnp.float32)
    pe = make_pe_table(MAX_LEN, D)

    # Path 1: offsets=None, eval mode  ->  x + pe[:, :S]
    out = jax.block_until_ready(positional_encoding(x, pe, deterministic=True))
    ref = x + pe[None, :S, :]
    assert out.shape == (B, S, D) and out.dtype == x.dtype
    assert jnp.allclose(out, ref, atol=1e-6, rtol=1e-6), "offsets=None path mismatch"

    # Path 2a: explicit offsets, f32 (jnp.take gather from the resident table).
    offsets = jax.random.randint(koff, (B, S), 0, MAX_LEN, dtype=jnp.int32)
    out2 = jax.block_until_ready(
        positional_encoding(x, pe, offsets=offsets, deterministic=True))
    ref2 = x + pe[offsets]
    assert jnp.allclose(out2, ref2, atol=1e-6, rtol=1e-6), "offsets (take) path mismatch"

    # Path 2b: explicit offsets, bf16 (one-hot MXU gather path).
    x_bf = x.astype(jnp.bfloat16)
    out2b = jax.block_until_ready(
        positional_encoding(x_bf, pe, offsets=offsets, deterministic=True))
    ref2b = x_bf + pe.astype(jnp.bfloat16)[offsets]
    assert out2b.dtype == jnp.bfloat16
    assert jnp.allclose(out2b.astype(jnp.float32), ref2b.astype(jnp.float32),
                        atol=5e-2, rtol=5e-2), "offsets (one-hot matmul) path mismatch"

    # Path 3: training-mode inverted dropout (in-kernel counter-based keep mask).
    # TODO(synk): RNG stream differs from torch nn.Dropout; semantics (Bernoulli keep
    # with prob 1-p, scale by 1/(1-p)) match, exact mask values do not.
    p = 0.1
    out3 = jax.block_until_ready(
        positional_encoding(x, pe, deterministic=False, p=p, rng_key=kd))
    assert out3.shape == (B, S, D) and out3.dtype == x.dtype
    scaled = (x + pe[None, :S, :]) * (1.0 / (1.0 - p))
    kept = jnp.isclose(out3, scaled, atol=1e-6, rtol=1e-5)
    dropped = out3 == 0.0
    assert bool(jnp.all(kept | dropped)), "dropout output must be 0 or scaled keep"
    keep_frac = float(jnp.mean(kept.astype(jnp.float32)))
    assert 0.70 <= keep_frac <= 0.995, f"keep fraction {keep_frac} outside expected range"

    print("KERNEL_OK")
</pallas_src>

<mosaic_0001>
module attributes {stable_mosaic.version = 11 : i64} {
  func.func @_posenc_kernel(%arg0: i32, %arg1: i32, %arg2: memref<1x8x32xf32, #tpu.memory_space<vmem>>, %arg3: memref<8x32xf32, #tpu.memory_space<vmem>>, %arg4: memref<1x8x32xf32, #tpu.memory_space<vmem>>) attributes {dimension_semantics = [#tpu.dimension_semantics<parallel>, #tpu.dimension_semantics<parallel>], iteration_bounds = array<i64: 1, 2>, scalar_prefetch = 0 : i64, scratch_operands = 0 : i64, tpu.core_type = #tpu.core_type<tc>, window_params = [{transform_indices = @transform_0, window_bounds = array<i64: 1, 8, 32>}, {transform_indices = @transform_1, window_bounds = array<i64: 8, 32>}, {transform_indices = @transform_2, window_bounds = array<i64: 1, 8, 32>}]} {
    %c0 = arith.constant 0 : index
    %c0_0 = arith.constant 0 : index
    %c0_1 = arith.constant 0 : index
    %0 = vector.load %arg2[%c0, %c0_0, %c0_1] : memref<1x8x32xf32, #tpu.memory_space<vmem>>, vector<1x8x32xf32>
    %1 = vector.shape_cast %0 : vector<1x8x32xf32> to vector<8x32xf32>
    %c0_2 = arith.constant 0 : index
    %c0_3 = arith.constant 0 : index
    %2 = vector.load %arg3[%c0_2, %c0_3] : memref<8x32xf32, #tpu.memory_space<vmem>>, vector<8x32xf32>
    %3 = arith.addf %1, %2 : vector<8x32xf32>
    %c0_4 = arith.constant 0 : index
    %c0_5 = arith.constant 0 : index
    %c0_6 = arith.constant 0 : index
    %4 = vector.load %arg4[%c0_4, %c0_5, %c0_6] : memref<1x8x32xf32, #tpu.memory_space<vmem>>, vector<1x8x32xf32>
    %5 = vector.shape_cast %4 : vector<1x8x32xf32> to vector<8x32xf32>
    %6 = vector.shape_cast %3 : vector<8x32xf32> to vector<1x8x32xf32>
    tpu.vector_store %arg4[%c0_4, %c0_5, %c0_6], %6 {strides = array<i32>} : memref<1x8x32xf32, #tpu.memory_space<vmem>>, vector<1x8x32xf32>,
    return
  }
  func.func @transform_0(%arg0: i32, %arg1: i32) -> (i32, i32, i32) {
    %c0_i32 = arith.constant 0 : i32
    %c0_i32_0 = arith.constant 0 : i32
    return %arg1, %arg0, %c0_i32 : i32, i32, i32
  }
  func.func @transform_1(%arg0: i32, %arg1: i32) -> (i32, i32) {
    %c0_i32 = arith.constant 0 : i32
    %c0_i32_0 = arith.constant 0 : i32
    return %arg0, %c0_i32 : i32, i32
  }
  func.func @transform_2(%arg0: i32, %arg1: i32) -> (i32, i32, i32) {
    %c0_i32 = arith.constant 0 : i32
    %c0_i32_0 = arith.constant 0 : i32
    return %arg1, %arg0, %c0_i32 : i32, i32, i32
  }
}

</mosaic_0001>

<bundles_post_ra>
// kernel: tpu_custom_call.1
= control target key start
LH: loop header
LB: loop body
LE: loop exit
PB: predicated region body
PF: predicated region fallthrough
CT: control target
= control target key end

     0   :  { %7 = vsyncpa [#allocation3], 0  ;;  %s565_s0 = inlined_call_operand.vmem [shape: f32[2,8,32], index: 0, kind: input, shape index: {}]   ;;  %s566_s1 = inlined_call_operand.vmem [shape: f32[64,32], index: 1, kind: input, shape index: {}]   ;;  %s567_s2 = inlined_call_operand.hbm [shape: f32[2,8,32], index: 2, kind: output, shape index: {}]  }
   0x1   :  { %9 = vsyncpa [#allocation3 + $0x1], 0  ;;  %s450_s9 = smov 0   ;;  %s452_s10 = smov 0  }
   0x2   :  { %s454_s11 = smov 0   ;;  %s456_s12 = smov 0  }
   0x3   :  { %s458_s13 = smov 0   ;;  %s460_s14 = smov 0  }
   0x4 LB: > { %s287_s15 = sadd.s32 4294967295, %s432_s14   ;;  %s288_s16 = sadd.s32 4294967294, %s432_s14   ;;  %s432_s14 = sphi %s460_s14, %s15_s14   ;;  %s428_s13 = sphi %s458_s13, %s574_s13   ;;  %s424_s12 = sphi %s456_s12, %s573_s12   ;;  %s420_s11 = sphi %s454_s11, %s572_s11   ;;  %s416_s10 = sphi %s452_s10, %s571_s10   ;;  %s412_s9 = sphi %s450_s9, %s570_s9  }
   0x5   : > { %s24_s17 = sadd.s32 1, %s428_s13  ;;  %s90_s18 = sadd.s32 1, %s420_s11 }
   0x6   : > { %p25_p0 = scmp.ge.s32.totalorder %s24_s17, 2  ;;  %p100_p1 = scmp.ne.s32.totalorder %s420_s11, %s416_s10 }
   0x7   : > { %p101_p2 = scmp.eq.s32.totalorder %s287_s15, 1  ;;  %p106_p3 = scmp.ne.s32.totalorder %s416_s10, %s412_s9 }
   0x8   : > { %s576_s17 = smov (%p25_p0, %s24_s17), 0  ;;  %p107_p5 = scmp.eq.s32.totalorder %s288_s16, 1 }
   0x9   : > { %p490_p4 = por %p101_p2, %p100_p1  ;;  %s85_s20 = ssub.s32 %s428_s13, %s576_s17 }
   0xa   : > { %p292_p6 = scmp.ge.s32.totalorder %s432_s14, 1  ;;  %p88_p7 = scmp.eq.s32.totalorder %s85_s20, 0 }
   0xb   : > { %p497_p8 = por %p107_p5, %p106_p3  ;;  %p142_p9 = scmp.lt.s32.totalorder %s432_s14, 3 }
   0xc   : > { %s503_s22 = scalar_select %p88_p7, %s420_s11, %s90_s18  }
   0xd   : > { %p143_p10 = pnand %p292_p6, %p142_p9 }
   0xe   : > { %s167_s23 = sand.u32 (!%p143_p10), 1, %s416_s10   ;;  %p170_p11 = scmp.lt.s32.totalorder (!%p143_p10), %s424_s12, 1  ;;  %v182_v0 = vld [vmem:[%s566_s1] sm:$0xff] (!%p143_p10)  ;;  %vm184_vm0 = vcmask (!%p143_p10), 261120  }
   0xf   : > { %146 = sbr.rel (%p143_p10) target bundleno = 43 (0x2b), region = 28  ;;  %s293_s24 = sshll.u32 (!%p143_p10), %s167_s23, 3 }
  0x10   : > { %s296_s26 = sshll.u32 (!%p143_p10), %s424_s12, 7  ;;  %s169_s30 = scalar_lea.vmem (!%p143_p10), [#allocation2], %s293_s24 }
  0x11   : > { %s201_s3 = sshll.u32 (!%p143_p10), %s169_s30, 4  ;;  %s187_s15 = scalar_lea.sflag (!%p143_p10), [#allocation3], %s167_s23  ;;  %s515_s3 = int_to_ptr.vmem [resolvable:$true] %s201_s3 }
  0x12   : > { %s354_s16 = scalar_lea.vmem (!%p143_p10), %s515_s3, 128  ;;  %s434_s18 = smov (!%p143_p10), [#allocation2]  }
  0x13   : > { %p355_p12 = scmp.ne.s32.totalorder (!%p143_p10), %s515_s3, %s354_s16  ;;  %s358_s20 = sshll.u32 (!%p143_p10), %s434_s18, 4  ;;  %s359_s20 = int_to_ptr.vmem [resolvable:$false] %s358_s20 }
  0x14   : > { %s360_s24 = scalar_lea.vmem (!%p143_p10), %s359_s20, 256  ;;  %p361_p1 = scmp.lt.s32.totalorder (!%p143_p10), %s515_s3, %s359_s20 }
  0x15   : > { %p356_p13 = pnand (!%p143_p10), %p355_p12, %p490_p4  ;;  %p362_p2 = scmp.lt.s32.totalorder (!%p143_p10), %s360_s24, %s354_s16 }
  0x16   : > { %s171_s25 = scalar_select %p170_p11, %s424_s12, 1 }
  0x17   : > { %s520_s12 = scalar_lea.hbm %s567_s2, %s296_s26  ;;  %p357_p0 = pneg %p356_p13 }
  0x18   : > { %s294_s27 = sshll.u32 %s171_s25, 3  ;;  %p363_p3 = por %p362_p2, %p361_p1 }
  0x19   : > { %s176_s6 = scalar_lea.vmem %s565_s0, %s294_s27 }
  0x1a   : > { %v181_v1 = vld [vmem:[%s176_s6] sm:$0xff]  ;;  %p364_p5 = pnand %p363_p3, %p357_p0 }
  0x1b   : > { %v183_v2 = vadd.f32 %v182_v0, %v181_v1 }
  0x1d   : > { %185 = vst.msk [vmem:[%s169_s30] sm:$0xff] %vm184_vm0, %v183_v2 }
  0x1e   : > { %367 = shalt.err (!%p364_p5)
}
  0x1f   : > { %s368_s23 = scalar_lea.hbm %s520_s12, 128  ;;  %s372_s27 = scalar_lea.hbm %s567_s2, 256 }
  0x20   : > { %p369_p6 = scmp.ne.s32.totalorder %s520_s12, %s368_s23  ;;  %p373_p10 = scmp.lt.u32.totalorder %s520_s12, %s567_s2 }
  0x21   : > { %p374_p11 = scmp.lt.u32.totalorder %s372_s27, %s368_s23  ;;  %p376_p13 = scmp.lt.u32.totalorder %s368_s23, %s520_s12 }
  0x22   : > { %p370_p7 = pnand %p369_p6, %p490_p4 }
  0x23   : > { %p375_p12 = por %p374_p11, %p373_p10 }
  0x24   : > { %p371_p9 = pneg %p370_p7 }
  0x25   : > { %p377_p0 = por %p376_p13, %p375_p12 }
  0x27   : > { %p378_p1 = pnand %p377_p0, %p371_p9 }
  0x29   : > { %381 = shalt.err (!%p378_p1)
}
  0x2a   : > { %299 = dma.vmem_to_hbm [thread:$0]  (%p490_p4), %s515_s3, 128, %s520_s12, %s187_s15  }
  0x2b PF: > { %p305_p2 = scmp.ge.s32.totalorder %s432_s14, 2  ;;  %s213_s30 = sand.u32 1, %s412_s9  }
  0x2c   : > { %s214_s4 = scalar_lea.sflag [#allocation3], %s213_s30 }
  0x2d   : > { %p302_p3 = pnand %p305_p2, %p497_p8 }
  0x2f   : > { %407 = dma.done.wait (!%p302_p3), %s214_s4, 128  }
  0x30   : > { %409 = vsyncadd (!%p302_p3), %s214_s4, 4294967168  ;;  %s15_s14 = sadd.s32 1, %s432_s14   ;;  %s570_s9 = smov %s416_s10 }
  0x31   : > { %p12_p5 = scmp.ge.s32.totalorder %s15_s14, 4   ;;  %s571_s10 = smov %s420_s11 }
  0x32   : > { %s572_s11 = smov %s503_s22  ;;  %s573_s12 = smov %s428_s13 }
  0x33   : > { %s574_s13 = smov %s576_s17  ;;  %14 = sbr.rel (!%p12_p5) target bundleno = 4 (0x4), region = 66 }
  0x3a   :  { %219 = vsyncpa [#allocation3], 1 }
  0x3b   :  { %221 = vsyncpa [#allocation3 + $0x1], 1 }

</bundles_post_ra>
